<compile_context>
chip_gen: v6e
topology: v6e:2x2x1
jax: 0.10.0
libtpu: 0.0.40
codegen_flags: <defaults>
</compile_context>

<pallas_src>
import functools
import math

import numpy as np

import jax
import jax.numpy as jnp
from jax import lax
from jax.experimental import pallas as pl
from jax.experimental.pallas import tpu as pltpu


_TAPS = tuple((dy, dx) for dy in (-1, 0, 1) for dx in (-1, 0, 1))
_CENTER = 4          # index of tap (0, 0) in _TAPS
_UNROLL_MAX = 8      # static-unroll threshold for the per-image loop


def _image_slice(n, hw):
    """pl.ds covering image n inside a (C, nb*HW) slab."""
    start = n * hw
    if not isinstance(start, int):
        start = pl.multiple_of(start, hw)
    return pl.ds(start, hw)


def _loop_images(nb, body):
    """Static unroll for small nb (scheduler visibility); fori_loop for large
    nb so live ranges stay bounded and the hot body does not spill vregs."""
    if nb <= _UNROLL_MAX:
        for n in range(nb):
            body(n)
    else:
        def wrapped(n, carry):
            body(n)
            return carry
        lax.fori_loop(0, nb, wrapped, 0)


def convblock_kernel(x_ref, wm_ref, pw_ref, o_ref, *scratch, width, batch_dot):
    """Fused depthwise-3x3 -> ReLU -> 1x1 conv -> residual (NCHW native).

    x_ref:   (nb, C, H*W)     input block; spatial flattened on the lane axis
    wm_ref:  (9, C, H*W)      fused masked taps: dw[t, c] * in_bounds_mask[t, p]
    pw_ref:  (Cout, C)        1x1 conv weights
    o_ref:   (nb, Cout, H*W)  output block
    scratch (only when batch_dot):
      y_scr: (C, nb*H*W)      post-ReLU activations for the whole block
      z_scr: (Cout, nb*H*W)   1x1-conv outputs for the whole block
    """
    nb, _, hw = x_ref.shape
    pw = pw_ref[...].astype(jnp.float32)          # (Cout, C), tiny, stays hot

    def depthwise_relu(xn):
        # 3x3 "SAME" depthwise: 8 XLU rolls of the flattened spatial axis and
        # ONE fused (mask x tap-weight) multiply-add per tap on the VPU.
        acc = xn * wm_ref[_CENTER]                # centre tap always in-bounds
        for t, (dy, dx) in enumerate(_TAPS):
            if dy == 0 and dx == 0:
                continue
            off = dy * width + dx                 # flattened spatial offset
            shifted = pltpu.roll(xn, shift=(-off) % hw, axis=1)
            acc = acc + shifted * wm_ref[t]
        return jnp.maximum(acc, 0.0)              # ReLU

    if batch_dot:
        y_scr, z_scr = scratch

        def dw_body(n):
            xn = x_ref[n].astype(jnp.float32)     # (C, HW), lane-dense
            y_scr[:, _image_slice(n, hw)] = depthwise_relu(xn)

        _loop_images(nb, dw_body)

        # One (Cout, C) @ (C, nb*HW) MXU matmul per grid step: amortizes MXU
        # weight-push / result-drain over the whole batch block.
        z_scr[...] = jnp.dot(pw, y_scr[...], preferred_element_type=jnp.float32)

        def res_body(n):
            z = z_scr[:, _image_slice(n, hw)]
            o_ref[n] = (z + x_ref[n].astype(jnp.float32)).astype(o_ref.dtype)

        _loop_images(nb, res_body)
    else:
        def body(n):
            xn = x_ref[n].astype(jnp.float32)
            y = depthwise_relu(xn)
            z = jnp.dot(pw, y, preferred_element_type=jnp.float32)
            o_ref[n] = (z + xn).astype(o_ref.dtype)

        _loop_images(nb, body)


def _tpu_defaults():
    """(vmem_limit_bytes, block_budget_bytes, prefer_multi_step) per generation.
    Unknown hardware falls back to the v7x-safe (smallest-VMEM) settings."""
    kind = ""
    try:
        kind = jax.devices()[0].device_kind.lower()
    except Exception:
        pass
    if "v7" in kind:
        # 64 MiB VMEM per TensorCore, 2 TCs/chip: smaller blocks, and keep >=2
        # grid steps so dimension_semantics=("parallel",) can use both cores.
        return 48 * 1024 * 1024, 40 * 1024 * 1024, True
    if "v5" in kind or "v6" in kind:
        # 128 MiB VMEM, single TensorCore: one big block beats extra grid
        # steps (each extra step is a purely serial loop iteration).
        return 96 * 1024 * 1024, 80 * 1024 * 1024, False
    return 48 * 1024 * 1024, 40 * 1024 * 1024, True


def _pick_batch_block(n, *, c, cout, hw, itemsize, batch_dot_possible,
                      vmem_budget_bytes, target_block_bytes, prefer_multi_step):
    """Largest divisor of n whose per-step VMEM footprint (double-buffered
    in/out blocks + resident weights + scratch + f32 working set) fits the
    budget, capped by target_block_bytes of input per step."""
    in_b = c * hw * itemsize
    out_b = cout * hw * itemsize
    # Batched-dot path adds two single-buffered f32 scratch slabs per sample.
    scr_b = (c + cout) * hw * 4 if batch_dot_possible else 0
    per_sample = 2 * in_b + 2 * out_b + scr_b          # 2x = double buffering
    # Block-resident operands (masked taps + 1x1 weights, double-buffered) plus
    # roughly 4 (C, HW) f32 temporaries live inside the per-image body.
    fixed = 2 * 9 * c * hw * 4 + 2 * cout * c * 4 + 4 * c * hw * 4
    cap = max((vmem_budget_bytes - fixed) // per_sample, 1)
    cap = min(cap, max(target_block_bytes // max(in_b, 1), 1))
    divisors = [d for d in range(1, n + 1) if n % d == 0]
    fitting = [d for d in divisors if d <= cap]
    nb = max(fitting) if fitting else 1
    if prefer_multi_step and n // nb < 2:
        multi = [d for d in fitting if n // d >= 2]
        if multi:
            nb = max(multi)
    return nb


def convblock_pallas(x_nchw, dw_oihw, pw_oihw, *, target_block_bytes=8 << 20):
    """x_nchw: (N, C, H, W); dw_oihw: (C, 1, 3, 3); pw_oihw: (Cout, C, 1, 1)."""
    N, C, H, W = x_nchw.shape
    Cout = pw_oihw.shape[0]
    assert Cout == C, "stride=1 ConvBlock residual requires Cout == C"
    HW = H * W

    # Free (metadata-only) reshape: NCHW -> (N, C, H*W). No transposes / pads.
    x_flat = x_nchw.reshape(N, C, HW)

    # Fused masked depthwise weights: wmask[t, c, p] = dw_tap[t, c] * in_bounds[t, p].
    # The 3x3 zero padding, per-tap channel weight and per-tap boundary mask
    # collapse into a single multiply per tap inside the kernel; the operand is
    # lane-dense and stays resident across grid steps (constant index_map).
    dw9 = jnp.transpose(dw_oihw[:, 0, :, :], (1, 2, 0)).reshape(9, C)  # (9, C)
    hh, ww = np.meshgrid(np.arange(H), np.arange(W), indexing="ij")
    masks = np.stack(
        [((hh + dy >= 0) & (hh + dy < H) & (ww + dx >= 0) & (ww + dx < W)).reshape(-1)
         for dy, dx in _TAPS]).astype(np.float32)                      # (9, HW)
    wmask = (dw9.astype(jnp.float32)[:, :, None]
             * jnp.asarray(masks)[:, None, :])                         # (9, C, HW)

    pw = pw_oihw[:, :, 0, 0].astype(jnp.float32)                       # (Cout, C)

    vmem_limit, vmem_budget, prefer_multi_step = _tpu_defaults()
    batch_dot_possible = (HW % 128 == 0)
    nb = _pick_batch_block(
        N, c=C, cout=Cout, hw=HW, itemsize=x_nchw.dtype.itemsize,
        batch_dot_possible=batch_dot_possible,
        vmem_budget_bytes=vmem_budget,
        target_block_bytes=target_block_bytes,
        prefer_multi_step=prefer_multi_step)
    batch_dot = batch_dot_possible and nb > 1
    grid = (N // nb,)

    scratch_shapes = (
        [pltpu.VMEM((C, nb * HW), jnp.float32),
         pltpu.VMEM((Cout, nb * HW), jnp.float32)] if batch_dot else [])

    out_flat = pl.pallas_call(
        functools.partial(convblock_kernel, width=W, batch_dot=batch_dot),
        out_shape=jax.ShapeDtypeStruct((N, Cout, HW), x_nchw.dtype),
        grid=grid,
        in_specs=[
            pl.BlockSpec((nb, C, HW), lambda b: (b, 0, 0)),     # input block
            pl.BlockSpec((9, C, HW), lambda b: (0, 0, 0)),      # fused masked taps
            pl.BlockSpec((Cout, C), lambda b: (0, 0)),          # 1x1 weights
        ],
        out_specs=pl.BlockSpec((nb, Cout, HW), lambda b: (b, 0, 0)),
        scratch_shapes=scratch_shapes,
        compiler_params=pltpu.CompilerParams(
            dimension_semantics=("parallel",),
            vmem_limit_bytes=vmem_limit,
        ),
    )(x_flat, wmask, pw)

    return out_flat.reshape(N, Cout, H, W)


def convblock_reference(x_nchw, dw_oihw, pw_oihw):
    """Pure-JAX reference using lax.conv (matches F.conv2d semantics)."""
    C = x_nchw.shape[1]
    dn = lax.conv_dimension_numbers(x_nchw.shape, dw_oihw.shape,
                                    ("NCHW", "OIHW", "NCHW"))
    y = lax.conv_general_dilated(
        x_nchw, dw_oihw, window_strides=(1, 1), padding=((1, 1), (1, 1)),
        dimension_numbers=dn, feature_group_count=C)
    y = jnp.maximum(y, 0.0)
    dn2 = lax.conv_dimension_numbers(y.shape, pw_oihw.shape,
                                     ("NCHW", "OIHW", "NCHW"))
    y = lax.conv_general_dilated(
        y, pw_oihw, window_strides=(1, 1), padding=((0, 0), (0, 0)),
        dimension_numbers=dn2)
    return y + x_nchw


if __name__ == "__main__":
    # Small deterministic shapes consistent with the module (stride=1,
    # ouplane = in_channels).
    N, C, H, W = 2, 32, 16, 16
    key = jax.random.PRNGKey(0)
    kx, kdw, kpw = jax.random.split(key, 3)

    x = jax.random.normal(kx, (N, C, H, W), dtype=jnp.float32)

    # conv1: depthwise, torch weight shape (C, 1, 3, 3), kaiming-uniform-ish.
    bound_dw = 1.0 / math.sqrt(1 * 3 * 3)
    dw_oihw = jax.random.uniform(kdw, (C, 1, 3, 3), dtype=jnp.float32,
                                 minval=-bound_dw, maxval=bound_dw)
    # conv2: 1x1, torch weight shape (Cout=C, Cin=C, 1, 1).
    bound_pw = 1.0 / math.sqrt(C)
    pw_oihw = jax.random.uniform(kpw, (C, C, 1, 1), dtype=jnp.float32,
                                 minval=-bound_pw, maxval=bound_pw)

    out = jax.block_until_ready(convblock_pallas(x, dw_oihw, pw_oihw))
    ref = jax.block_until_ready(convblock_reference(x, dw_oihw, pw_oihw))

    assert out.shape == (N, C, H, W), out.shape
    err = float(jnp.max(jnp.abs(out - ref)))
    assert err < 1e-4, err
    print("KERNEL_OK")
</pallas_src>

<mosaic_0001>
module attributes {stable_mosaic.version = 11 : i64} {
  func.func @convblock_kernel(%arg0: i32, %arg1: memref<1x32x256xf32, #tpu.memory_space<vmem>>, %arg2: memref<9x32x256xf32, #tpu.memory_space<vmem>>, %arg3: memref<32x32xf32, #tpu.memory_space<vmem>>, %arg4: memref<1x32x256xf32, #tpu.memory_space<vmem>>) attributes {dimension_semantics = [#tpu.dimension_semantics<parallel>], iteration_bounds = array<i64: 2>, scalar_prefetch = 0 : i64, scratch_operands = 0 : i64, tpu.core_type = #tpu.core_type<tc>, window_params = [{transform_indices = @transform_0, window_bounds = array<i64: 1, 32, 256>}, {pipeline_mode = #tpu.pipeline_mode<synchronous>, transform_indices = @transform_1, window_bounds = array<i64: 9, 32, 256>}, {pipeline_mode = #tpu.pipeline_mode<synchronous>, transform_indices = @transform_2, window_bounds = array<i64: 32, 32>}, {transform_indices = @transform_3, window_bounds = array<i64: 1, 32, 256>}]} {
    %c0 = arith.constant 0 : index
    %c0_0 = arith.constant 0 : index
    %0 = vector.load %arg3[%c0, %c0_0] : memref<32x32xf32, #tpu.memory_space<vmem>>, vector<32x32xf32>
    %c0_1 = arith.constant 0 : index
    %c0_2 = arith.constant 0 : index
    %c0_3 = arith.constant 0 : index
    %1 = vector.load %arg1[%c0_1, %c0_2, %c0_3] : memref<1x32x256xf32, #tpu.memory_space<vmem>>, vector<1x32x256xf32>
    %2 = vector.shape_cast %1 : vector<1x32x256xf32> to vector<32x256xf32>
    %c4 = arith.constant 4 : index
    %c0_4 = arith.constant 0 : index
    %c0_5 = arith.constant 0 : index
    %3 = vector.load %arg2[%c4, %c0_4, %c0_5] : memref<9x32x256xf32, #tpu.memory_space<vmem>>, vector<1x32x256xf32>
    %4 = vector.shape_cast %3 : vector<1x32x256xf32> to vector<32x256xf32>
    %5 = arith.mulf %2, %4 : vector<32x256xf32>
    %c17_i32 = arith.constant 17 : i32
    %6 = tpu.dynamic_rotate %2 by %c17_i32 dim 1 : vector<32x256xf32>, i32 -> vector<32x256xf32>
    %c0_6 = arith.constant 0 : index
    %c0_7 = arith.constant 0 : index
    %c0_8 = arith.constant 0 : index
    %7 = vector.load %arg2[%c0_6, %c0_7, %c0_8] : memref<9x32x256xf32, #tpu.memory_space<vmem>>, vector<1x32x256xf32>
    %8 = vector.shape_cast %7 : vector<1x32x256xf32> to vector<32x256xf32>
    %9 = arith.mulf %6, %8 : vector<32x256xf32>
    %10 = arith.addf %5, %9 : vector<32x256xf32>
    %c16_i32 = arith.constant 16 : i32
    %11 = tpu.dynamic_rotate %2 by %c16_i32 dim 1 : vector<32x256xf32>, i32 -> vector<32x256xf32>
    %c1 = arith.constant 1 : index
    %c0_9 = arith.constant 0 : index
    %c0_10 = arith.constant 0 : index
    %12 = vector.load %arg2[%c1, %c0_9, %c0_10] : memref<9x32x256xf32, #tpu.memory_space<vmem>>, vector<1x32x256xf32>
    %13 = vector.shape_cast %12 : vector<1x32x256xf32> to vector<32x256xf32>
    %14 = arith.mulf %11, %13 : vector<32x256xf32>
    %15 = arith.addf %10, %14 : vector<32x256xf32>
    %c15_i32 = arith.constant 15 : i32
    %16 = tpu.dynamic_rotate %2 by %c15_i32 dim 1 : vector<32x256xf32>, i32 -> vector<32x256xf32>
    %c2 = arith.constant 2 : index
    %c0_11 = arith.constant 0 : index
    %c0_12 = arith.constant 0 : index
    %17 = vector.load %arg2[%c2, %c0_11, %c0_12] : memref<9x32x256xf32, #tpu.memory_space<vmem>>, vector<1x32x256xf32>
    %18 = vector.shape_cast %17 : vector<1x32x256xf32> to vector<32x256xf32>
    %19 = arith.mulf %16, %18 : vector<32x256xf32>
    %20 = arith.addf %15, %19 : vector<32x256xf32>
    %c1_i32 = arith.constant 1 : i32
    %21 = tpu.dynamic_rotate %2 by %c1_i32 dim 1 : vector<32x256xf32>, i32 -> vector<32x256xf32>
    %c3 = arith.constant 3 : index
    %c0_13 = arith.constant 0 : index
    %c0_14 = arith.constant 0 : index
    %22 = vector.load %arg2[%c3, %c0_13, %c0_14] : memref<9x32x256xf32, #tpu.memory_space<vmem>>, vector<1x32x256xf32>
    %23 = vector.shape_cast %22 : vector<1x32x256xf32> to vector<32x256xf32>
    %24 = arith.mulf %21, %23 : vector<32x256xf32>
    %25 = arith.addf %20, %24 : vector<32x256xf32>
    %c255_i32 = arith.constant 255 : i32
    %26 = tpu.dynamic_rotate %2 by %c255_i32 dim 1 : vector<32x256xf32>, i32 -> vector<32x256xf32>
    %c5 = arith.constant 5 : index
    %c0_15 = arith.constant 0 : index
    %c0_16 = arith.constant 0 : index
    %27 = vector.load %arg2[%c5, %c0_15, %c0_16] : memref<9x32x256xf32, #tpu.memory_space<vmem>>, vector<1x32x256xf32>
    %28 = vector.shape_cast %27 : vector<1x32x256xf32> to vector<32x256xf32>
    %29 = arith.mulf %26, %28 : vector<32x256xf32>
    %30 = arith.addf %25, %29 : vector<32x256xf32>
    %c241_i32 = arith.constant 241 : i32
    %31 = tpu.dynamic_rotate %2 by %c241_i32 dim 1 : vector<32x256xf32>, i32 -> vector<32x256xf32>
    %c6 = arith.constant 6 : index
    %c0_17 = arith.constant 0 : index
    %c0_18 = arith.constant 0 : index
    %32 = vector.load %arg2[%c6, %c0_17, %c0_18] : memref<9x32x256xf32, #tpu.memory_space<vmem>>, vector<1x32x256xf32>
    %33 = vector.shape_cast %32 : vector<1x32x256xf32> to vector<32x256xf32>
    %34 = arith.mulf %31, %33 : vector<32x256xf32>
    %35 = arith.addf %30, %34 : vector<32x256xf32>
    %c240_i32 = arith.constant 240 : i32
    %36 = tpu.dynamic_rotate %2 by %c240_i32 dim 1 : vector<32x256xf32>, i32 -> vector<32x256xf32>
    %c7 = arith.constant 7 : index
    %c0_19 = arith.constant 0 : index
    %c0_20 = arith.constant 0 : index
    %37 = vector.load %arg2[%c7, %c0_19, %c0_20] : memref<9x32x256xf32, #tpu.memory_space<vmem>>, vector<1x32x256xf32>
    %38 = vector.shape_cast %37 : vector<1x32x256xf32> to vector<32x256xf32>
    %39 = arith.mulf %36, %38 : vector<32x256xf32>
    %40 = arith.addf %35, %39 : vector<32x256xf32>
    %c239_i32 = arith.constant 239 : i32
    %41 = tpu.dynamic_rotate %2 by %c239_i32 dim 1 : vector<32x256xf32>, i32 -> vector<32x256xf32>
    %c8 = arith.constant 8 : index
    %c0_21 = arith.constant 0 : index
    %c0_22 = arith.constant 0 : index
    %42 = vector.load %arg2[%c8, %c0_21, %c0_22] : memref<9x32x256xf32, #tpu.memory_space<vmem>>, vector<1x32x256xf32>
    %43 = vector.shape_cast %42 : vector<1x32x256xf32> to vector<32x256xf32>
    %44 = arith.mulf %41, %43 : vector<32x256xf32>
    %45 = arith.addf %40, %44 : vector<32x256xf32>
    %cst = arith.constant 0.000000e+00 : f32
    %46 = vector.broadcast %cst : f32 to vector<32x256xf32>
    %47 = arith.maximumf %45, %46 : vector<32x256xf32>
    %cst_23 = arith.constant dense<0.000000e+00> : vector<32x256xf32>
    %48 = tpu.matmul %0, %47, %cst_23 {dimension_numbers = #tpu.dot_dimension_numbers<[1], [0], [0], [1], [0, 0, 1, 1], [], []>} : vector<32x32xf32>, vector<32x256xf32>, vector<32x256xf32> -> vector<32x256xf32>
    %49 = arith.addf %48, %2 : vector<32x256xf32>
    %c0_24 = arith.constant 0 : index
    %c0_25 = arith.constant 0 : index
    %c0_26 = arith.constant 0 : index
    %50 = vector.load %arg4[%c0_24, %c0_25, %c0_26] : memref<1x32x256xf32, #tpu.memory_space<vmem>>, vector<1x32x256xf32>
    %51 = vector.shape_cast %50 : vector<1x32x256xf32> to vector<32x256xf32>
    %52 = vector.shape_cast %49 : vector<32x256xf32> to vector<1x32x256xf32>
    tpu.vector_store %arg4[%c0_24, %c0_25, %c0_26], %52 {strides = array<i32>} : memref<1x32x256xf32, #tpu.memory_space<vmem>>, vector<1x32x256xf32>,
    return
  }
  func.func @transform_0(%arg0: i32) -> (i32, i32, i32) {
    %c0_i32 = arith.constant 0 : i32
    %c0_i32_0 = arith.constant 0 : i32
    %c0_i32_1 = arith.constant 0 : i32
    return %arg0, %c0_i32, %c0_i32_0 : i32, i32, i32
  }
  func.func @transform_1(%arg0: i32) -> (i32, i32, i32) {
    %c0_i32 = arith.constant 0 : i32
    %c0_i32_0 = arith.constant 0 : i32
    %c0_i32_1 = arith.constant 0 : i32
    %c0_i32_2 = arith.constant 0 : i32
    return %c0_i32, %c0_i32_0, %c0_i32_1 : i32, i32, i32
  }
  func.func @transform_2(%arg0: i32) -> (i32, i32) {
    %c0_i32 = arith.constant 0 : i32
    %c0_i32_0 = arith.constant 0 : i32
    %c0_i32_1 = arith.constant 0 : i32
    return %c0_i32, %c0_i32_0 : i32, i32
  }
  func.func @transform_3(%arg0: i32) -> (i32, i32, i32) {
    %c0_i32 = arith.constant 0 : i32
    %c0_i32_0 = arith.constant 0 : i32
    %c0_i32_1 = arith.constant 0 : i32
    return %arg0, %c0_i32, %c0_i32_0 : i32, i32, i32
  }
}

</mosaic_0001>

<bundles_post_ra>
// kernel: tpu_custom_call.1
= control target key start
LH: loop header
LB: loop body
LE: loop exit
PB: predicated region body
PF: predicated region fallthrough
CT: control target
= control target key end

     0   :  { %8 = vsyncpa [#allocation3], 0  ;;  %s1725_s0 = inlined_call_operand.hbm [shape: f32[2,32,256], index: 0, kind: input, shape index: {}]   ;;  %s1726_s1 = inlined_call_operand.hbm [shape: f32[9,32,256], index: 1, kind: input, shape index: {}]   ;;  %s1727_s2 = inlined_call_operand.hbm [shape: f32[32,32], index: 2, kind: input, shape index: {}]   ;;  %s1728_s3 = inlined_call_operand.hbm [shape: f32[2,32,256], index: 3, kind: output, shape index: {}]  }
   0x1   :  { %10 = vsyncpa [#allocation3 + $0x1], 0 }
   0x2   :  { %11 = vsyncpa [#allocation6], 0 }
   0x3   :  { %12 = vsyncpa [#allocation4], 0 }
   0x4   :  { %14 = vsyncpa [#allocation4 + $0x1], 0  ;;  %s1173_s12 = smov 0   ;;  %s1175_s13 = smov 0  }
   0x5   :  { %s1177_s14 = smov 0   ;;  %s1179_s15 = smov 0  }
   0x6 LB: > { %s1194_s16 = sadd.s32 4294967295, %s1133_s15   ;;  %s872_s17 = sadd.s32 4294967294, %s1133_s15   ;;  %s1133_s15 = sphi %s1179_s15, %s1749_s15   ;;  %s1129_s14 = sphi %s1177_s14, %s1748_s14   ;;  %s1125_s13 = sphi %s1175_s13, %s1747_s13   ;;  %s1121_s12 = sphi %s1173_s12, %s1746_s12  }
   0x7   : > { %p40_p0 = scmp.ne.s32.totalorder %s1125_s13, %s1121_s12  ;;  %p1729_p1 = scmp.eq.s32.totalorder %s1194_s16, 0 }
   0x8   : > { %p106_p2 = scmp.eq.s32.totalorder %s1194_s16, 1  ;;  %p112_p3 = scmp.eq.s32.totalorder %s872_s17, 1 }
   0x9   : > { %p1203_p4 = por %p1729_p1, %p40_p0  ;;  %p873_p5 = scmp.ge.s32.totalorder %s1133_s15, 1 }
   0xa   : > { %p1208_p6 = por %p112_p3, %p40_p0  ;;  %p119_p7 = scmp.lt.s32.totalorder %s1133_s15, 3 }
   0xb   : > { %s1733_s18 = scalar_select %p1203_p4, 1, 0 }
   0xc   : > { %s1734_s19 = scalar_select %p1208_p6, 1, 0 }
   0xd   : > { %p1213_p8 = pnand %p873_p5, %p119_p7  ;;  %s1135_s21 = smov [#allocation5]  }
   0xe   : > { %s131_s22 = sshll.u32 %s1135_s21, 4  ;;  %s1136_s24 = smov [#allocation7]   ;;  %s132_s22 = int_to_ptr.vmem [resolvable:$true] %s131_s22 }
   0xf   : > { %s1735_s20 = scalar_select %p1213_p8, 1, 0 }
  0x10   : > { %p916_p9 = pneg %p1213_p8  ;;  %s144_s25 = sshll.u32 %s1136_s24, 4  ;;  %s145_s25 = int_to_ptr.vmem [resolvable:$true] %s144_s25 }
  0x11   : > { %s996_s26 = scalar_lea.vmem %s132_s22, 9216  ;;  %p1004_p5 = scmp.lt.s32.totalorder %s132_s22, %s132_s22 }
  0x12   : > { %p1222_p11 = pnand %p916_p9, %p1729_p1  ;;  %p997_p13 = scmp.ne.s32.totalorder %s132_s22, %s996_s26 }
  0x13   : > { %p1005_p7 = scmp.lt.s32.totalorder %s996_s26, %s996_s26 }
  0x14   : > { %p987_p12 = pneg %p1222_p11 }
  0x15   : > { %p1006_p10 = por %p1005_p7, %p1004_p5 }
  0x16   : > { %p999_p0 = pnand %p997_p13, %p987_p12 }
  0x18   : > { %p1000_p3 = pneg %p999_p0 }
  0x1a   : > { %p1007_p9 = pnand %p1006_p10, %p1000_p3 }
  0x1c   : > { %1010 = shalt.err (!%p1007_p9)
}
  0x1d   : > { %s1137_s27 = smov 256   ;;  %s1138_s28 = smov 16  }
  0x1e   : > { %919 = dma.hbm_to_vmem [thread:$0]  (!%p1222_p11), %s1726_s1, 9216, %s132_s22, [#allocation6], %s1137_s27, %s1137_s27, %s1138_s28  }
  0x1f   : > { %s1022_s4 = scalar_lea.vmem %s145_s25, 512  ;;  %p1030_p10 = scmp.lt.s32.totalorder %s145_s25, %s145_s25 }
  0x20   : > { %p1023_p13 = scmp.ne.s32.totalorder %s145_s25, %s1022_s4  ;;  %p1031_p3 = scmp.lt.s32.totalorder %s1022_s4, %s1022_s4 }
  0x22   : > { %p1025_p0 = pnand %p1023_p13, %p987_p12  ;;  %p1032_p7 = por %p1031_p3, %p1030_p10 }
  0x24   : > { %p1026_p5 = pneg %p1025_p0 }
  0x26   : > { %p1033_p9 = pnand %p1032_p7, %p1026_p5 }
  0x28   : > { %1036 = shalt.err (!%p1033_p9)
}
  0x29   : > { %s1139_s5 = smov 128   ;;  %s1140_s6 = smov 8  }
  0x2a   : > { %922 = dma.hbm_to_vmem [thread:$0]  (!%p1222_p11), %s1727_s2, 512, %s145_s25, [#allocation6], %s1139_s5, %s1139_s5, %s1140_s6  }
  0x2b   : > { %s1248_s9 = sadd.s32 1, %s1133_s15   ;;  %s27_s11 = sadd.s32 1, %s1129_s14 }
  0x2c   : > { %s24_s10 = ssub.s32 %s1133_s15, %s1248_s9  ;;  %p34_p13 = scmp.ne.s32.totalorder %s1129_s14, %s1125_s13 }
  0x2d   : > { %p25_p12 = scmp.eq.s32.totalorder %s24_s10, 0  ;;  %p35_p0 = scmp.eq.s32.totalorder %s1133_s15, 0 }
  0x2e   : > { %p1261_p10 = por %p106_p2, %p34_p13  ;;  %p933_p3 = scmp.lt.s32.totalorder %s1133_s15, 2 }
  0x2f   : > { %s1257_s17 = scalar_select %p25_p12, %s1129_s14, %s27_s11  }
  0x30   : > { %p36_p5 = por %p35_p0, %p34_p13  ;;  %s158_s22 = sand.u32 1, %s1129_s14  }
  0x31   : > { %s1737_s21 = scalar_select %p1261_p10, 1, 0 }
  0x32   : > { %s877_s23 = sshll.u32 %s158_s22, 6  ;;  %s894_s24 = sshll.u32 %s1133_s15, 10 }
  0x33   : > { %s1271_s29 = scalar_lea.hbm %s1725_s0, %s894_s24  ;;  %s162_s30 = scalar_lea.vmem [#allocation2], %s877_s23 }
  0x34   : > { %s169_s4 = sshll.u32 %s162_s30, 4  ;;  %p1275_p2 = pnand %p933_p3, %p36_p5  ;;  %s1273_s4 = int_to_ptr.vmem [resolvable:$true] %s169_s4 }
  0x35   : > { %s1279_s6 = scalar_lea.sflag [#allocation3], %s158_s22  ;;  %s1037_s7 = scalar_lea.hbm %s1271_s29, 1024 }
  0x36   : > { %p1038_p11 = scmp.ne.s32.totalorder %s1271_s29, %s1037_s7  ;;  %p1039_p7 = pneg %p1275_p2 }
  0x37   : > { %s1042_s11 = scalar_lea.hbm %s1725_s0, 2048  ;;  %p1043_p13 = scmp.lt.s32.totalorder %s1271_s29, %s1725_s0 }
  0x38   : > { %p1040_p9 = pnand %p1039_p7, %p1038_p11  ;;  %p1044_p0 = scmp.lt.s32.totalorder %s1042_s11, %s1037_s7 }
  0x3a   : > { %p1041_p12 = pneg %p1040_p9  ;;  %p1045_p5 = por %p1044_p0, %p1043_p13 }
  0x3c   : > { %p1046_p3 = pnand %p1045_p5, %p1041_p12 }
  0x3e   : > { %1049 = shalt.err (!%p1046_p3)
}
  0x3f   : > { %s1050_s22 = scalar_lea.vmem %s1273_s4, 1024  ;;  %s1141_s25 = smov [#allocation2]  }
  0x40   : > { %p1051_p1 = scmp.ne.s32.totalorder %s1273_s4, %s1050_s22  ;;  %s1055_s26 = sshll.u32 %s1141_s25, 4  ;;  %s1056_s26 = int_to_ptr.vmem [resolvable:$false] %s1055_s26 }
  0x41   : > { %s1057_s30 = scalar_lea.vmem %s1056_s26, 2048  ;;  %p1058_p9 = scmp.lt.s32.totalorder %s1273_s4, %s1056_s26 }
  0x42   : > { %p1053_p6 = pnand %p1051_p1, %p1039_p7  ;;  %p1059_p10 = scmp.lt.s32.totalorder %s1057_s30, %s1050_s22 }
  0x44   : > { %p1054_p11 = pneg %p1053_p6  ;;  %p1060_p4 = por %p1059_p10, %p1058_p9 }
  0x46   : > { %p1061_p8 = pnand %p1060_p4, %p1054_p11 }
  0x48   : > { %1064 = shalt.err (!%p1061_p8)
}
  0x49   : > { %926 = dma.hbm_to_vmem [thread:$0]  (!%p1275_p2), %s1271_s29, 1024, %s1273_s4, %s1279_s6, %s1137_s27, %s1137_s27, %s1138_s28  }
  0x4a   : > { %p1739_p1 = scmp.ne.s32.totalorder %s1735_s20, 0 }
  0x4b   : > { %s1306_s7 = sand.u32 (!%p1739_p1), 1, %s1125_s13   ;;  %p1740_p4 = scmp.ne.s32.totalorder (!%p1739_p1), %s1733_s18, 0 }
  0x4c   : > { %181 = sbr.rel (%p1739_p1) target bundleno = 549 (0x225), region = 32  ;;  %s881_s8 = sshll.u32 (!%p1739_p1), %s1306_s7, 6 }
  0x4d   : > { %s184_s10 = scalar_lea.sflag (!%p1739_p1), [#allocation3], %s1306_s7  ;;  %s187_s5 = scalar_lea.vmem (!%p1739_p1), [#allocation2], %s881_s8 }
  0x51   : > { %1108 = dma.done.wait (%p1740_p4), %s184_s10, 1024  }
  0x52   : > { %1110 = vsyncadd (%p1740_p4), %s184_s10, 4294966272  ;;  %p1741_p6 = scmp.eq.s32.totalorder %s1194_s16, 0 }
  0x54   : > { %1112 = dma.done.wait (%p1741_p6), [#allocation6], 9728   ;;  %p1742_p8 = pmov %p1741_p6 }
  0x55   : > { %v1320_v0 = vld [vmem:[%s187_s5 + $0x30] sm:$0xff]  ;;  %v1322_v1 = vld [vmem:[%s187_s5 + $0x20] sm:$0xff]  ;;  %s1142_s20 = smov 17   ;;  %v1326_v2 = vld [vmem:[%s187_s5 + $0x38] sm:$0xff]  ;;  %s1143_s18 = smov 16   ;;  %v263_v8 = vlaneseq  ;;  %v1150_v30 = vmov 0.0  }
  0x56   : > { %1114 = vsyncadd (%p1742_p8), [#allocation6], 4294957568  ;;  %253 = vrot.lane.b32.xlu0 %v1320_v0, %s1142_s20  ;;  %251 = vrot.lane.b32.xlu1 %v1322_v1, %s1142_s20  ;;  %v1328_v3 = vld [vmem:[%s187_s5 + $0x28] sm:$0xff]  ;;  %v1336_v4 = vld [vmem:[%s187_s5 + $0x18] sm:$0xff]  ;;  %s1144_s27 = smov 15   ;;  %s1145_s28 = smov 1  }
  0x57   : > { %v1338_v5 = vld [vmem:[%s187_s5 + $0x10] sm:$0xff]  ;;  %v1348_v6 = vld [vmem:[%s187_s5 + $0x8] sm:$0xff]  ;;  %v1350_v7 = vld [vmem:[%s187_s5] sm:$0xff]  ;;  %s1146_s29 = smov 127   ;;  %s1147_s4 = smov 113   ;;  %v1406_v9 = vand.u32 127, %v263_v8  ;;  %733 = vmatprep.mubr.f32.mxu0 %v1150_v30  ;;  %745 = vmatprep.mubr.f32.mxu1 %v1150_v30 }
  0x58   : > { %s1148_s6 = smov 112   ;;  %s1149_s11 = smov 111   ;;  %v237_v12 = vld [vmem:[#allocation5 + $0x130] sm:$0xff]  ;;  %v238_v13 = vld [vmem:[#allocation5 + $0x138] sm:$0xff]  ;;  %v235_v35 = vld [vmem:[#allocation5 + $0x120] sm:$0xff]  ;;  %vm656_vm8 = vcmask 261120  }
  0x59   : > { %vm265_vm0 = vcmp.lt.s32.totalorder %v1406_v9, 17  ;;  %v280_v14 = vld [vmem:[#allocation5 + $0x30] sm:$0xff]  ;;  %v281_v15 = vld [vmem:[#allocation5 + $0x38] sm:$0xff]  ;;  %vm314_vm1 = vcmp.lt.s32.totalorder %v1406_v9, 16  ;;  %v246_v22 = vmul.f32 %v238_v13, %v1326_v2  ;;  %v245_v23 = vmul.f32 %v237_v12, %v1320_v0  ;;  %v236_v38 = vld [vmem:[#allocation5 + $0x128] sm:$0xff]  ;;  %s217_s23 = scalar_lea.vmem [#allocation8], %s881_s8 }
  0x5a   : > { %261 = vrot.lane.b32.xlu0 %v1326_v2, %s1142_s20  ;;  %259 = vrot.lane.b32.xlu1 %v1328_v3, %s1142_s20  ;;  %v330_v26 = vld [vmem:[#allocation5 + $0x70] sm:$0xff]  ;;  %v331_v27 = vld [vmem:[#allocation5 + $0x78] sm:$0xff]  ;;  %v278_v39 = vld [vmem:[#allocation5 + $0x20] sm:$0xff]  ;;  %v244_v47 = vmul.f32 %v236_v38, %v1328_v3  ;;  %v243_v48 = vmul.f32 %v235_v35, %v1322_v1  ;;  %vm364_vm2 = vcmp.lt.s32.totalorder %v1406_v9, 15  ;;  %vm414_vm3 = vcmp.lt.s32.totalorder %v1406_v9, 1  ;;  %s780_s24 = sshll.u32 %s217_s23, 4  ;;  %s1674_s24 = int_to_ptr.vmem [resolvable:$true] %s780_s24 }
  0x5b   : > { %v279_v40 = vld [vmem:[#allocation5 + $0x28] sm:$0xff]  ;;  %v328_v51 = vld [vmem:[#allocation5 + $0x60] sm:$0xff]  ;;  %v380_v61 = vld [vmem:[#allocation5 + $0xb0] sm:$0xff]  ;;  %vm464_vm4 = vcmp.lt.s32.totalorder %v1406_v9, 127  ;;  %vm514_vm5 = vcmp.lt.s32.totalorder %v1406_v9, 113  ;;  %vm564_vm6 = vcmp.lt.s32.totalorder %v1406_v9, 112 }
  0x5c   : > { %v329_v52 = vld [vmem:[#allocation5 + $0x68] sm:$0xff]  ;;  %v381_v62 = vld [vmem:[#allocation5 + $0xb8] sm:$0xff]  ;;  %vm614_vm7 = vcmp.lt.s32.totalorder %v1406_v9, 111  ;;  %s895_s22 = sshll.u32 %s1194_s16, 10  ;;  %s767_s30 = scalar_lea.sflag [#allocation4], %s1306_s7 }
  0x5d   : > { %v219_v9 = vld [vmem:[#allocation7 + $0x8] sm:$0xff]  ;;  %s1681_s26 = scalar_lea.hbm %s1728_s3, %s895_s22  ;;  %s1065_s8 = scalar_lea.vmem %s1674_s24, 1024 }
  0x5e   : > { %304 = vrot.lane.b32.xlu0 %v1320_v0, %s1143_s18  ;;  %312 = vrot.lane.b32.xlu1 %v1326_v2, %s1143_s18  ;;  %p1066_p10 = scmp.ne.s32.totalorder %s1674_s24, %s1065_s8  ;;  %p1743_p2 = scmp.ne.s32.totalorder %s1737_s21, 0 }
  0x5f   : > { %s1151_s10 = smov [#allocation8]  }
  0x60   : > { %p1067_p7 = pnand %p1066_p10, %p1743_p2  ;;  %s1069_s5 = sshll.u32 %s1151_s10, 4  ;;  %s1070_s5 = int_to_ptr.vmem [resolvable:$false] %s1069_s5 }
  0x61   : > { %p1072_p13 = scmp.lt.s32.totalorder %s1674_s24, %s1070_s5 }
  0x62   : > { %257 = vrot.lane.b32.xlu1 %v1336_v4, %s1142_s20  ;;  %249 = vrot.lane.b32.xlu0 %v1338_v5, %s1142_s20  ;;  %p1068_p12 = pneg %p1067_p7 }
  0x66   : > { %310 = vrot.lane.b32.xlu1 %v1328_v3, %s1143_s18  ;;  %302 = vrot.lane.b32.xlu0 %v1322_v1, %s1143_s18 }
  0x6a   : > { %362 = vrot.lane.b32.xlu1 %v1326_v2, %s1144_s27  ;;  %354 = vrot.lane.b32.xlu0 %v1320_v0, %s1144_s27 }
  0x6e   : > { %255 = vrot.lane.b32.xlu1 %v1348_v6, %s1142_s20  ;;  %247 = vrot.lane.b32.xlu0 %v1350_v7, %s1142_s20  ;;  %s1071_s20 = scalar_lea.vmem %s1070_s5, 2048 }
  0x6f   : > { %p1073_p0 = scmp.lt.s32.totalorder %s1071_s20, %s1065_s8 }
  0x71   : > { %p1074_p5 = por %p1073_p0, %p1072_p13 }
  0x72   : > { %308 = vrot.lane.b32.xlu1 %v1336_v4, %s1143_s18  ;;  %300 = vrot.lane.b32.xlu0 %v1338_v5, %s1143_s18 }
  0x73   : > { %p1075_p3 = pnand %p1074_p5, %p1068_p12 }
  0x76   : > { %360 = vrot.lane.b32.xlu1 %v1328_v3, %s1144_s27  ;;  %352 = vrot.lane.b32.xlu0 %v1322_v1, %s1144_s27 }
  0x7a   : > { %412 = vrot.lane.b32.xlu1 %v1326_v2, %s1145_s28  ;;  %404 = vrot.lane.b32.xlu0 %v1320_v0, %s1145_s28 }
  0x7e   : > { %306 = vrot.lane.b32.xlu1 %v1348_v6, %s1143_s18  ;;  %298 = vrot.lane.b32.xlu0 %v1350_v7, %s1143_s18 }
  0x82   : > { %358 = vrot.lane.b32.xlu1 %v1336_v4, %s1144_s27  ;;  %350 = vrot.lane.b32.xlu0 %v1338_v5, %s1144_s27 }
  0x86   : > { %410 = vrot.lane.b32.xlu1 %v1328_v3, %s1145_s28  ;;  %402 = vrot.lane.b32.xlu0 %v1322_v1, %s1145_s28 }
  0x8a   : > { %462 = vrot.lane.b32.xlu1 %v1326_v2, %s1146_s29  ;;  %454 = vrot.lane.b32.xlu0 %v1320_v0, %s1146_s29 }
  0x8e   : > { %356 = vrot.lane.b32.xlu1 %v1348_v6, %s1144_s27  ;;  %348 = vrot.lane.b32.xlu0 %v1350_v7, %s1144_s27 }
  0x92   : > { %408 = vrot.lane.b32.xlu1 %v1336_v4, %s1145_s28  ;;  %400 = vrot.lane.b32.xlu0 %v1338_v5, %s1145_s28 }
  0x96   : > { %460 = vrot.lane.b32.xlu1 %v1328_v3, %s1146_s29  ;;  %452 = vrot.lane.b32.xlu0 %v1322_v1, %s1146_s29 }
  0x9a   : > { %512 = vrot.lane.b32.xlu1 %v1326_v2, %s1147_s4  ;;  %504 = vrot.lane.b32.xlu0 %v1320_v0, %s1147_s4 }
  0x9e   : > { %406 = vrot.lane.b32.xlu1 %v1348_v6, %s1145_s28  ;;  %398 = vrot.lane.b32.xlu0 %v1350_v7, %s1145_s28 }
  0xa2   : > { %458 = vrot.lane.b32.xlu1 %v1336_v4, %s1146_s29  ;;  %450 = vrot.lane.b32.xlu0 %v1338_v5, %s1146_s29 }
  0xa6   : > { %510 = vrot.lane.b32.xlu1 %v1328_v3, %s1147_s4  ;;  %502 = vrot.lane.b32.xlu0 %v1322_v1, %s1147_s4 }
  0xaa   : > { %562 = vrot.lane.b32.xlu1 %v1326_v2, %s1148_s6  ;;  %554 = vrot.lane.b32.xlu0 %v1320_v0, %s1148_s6 }
  0xae   : > { %456 = vrot.lane.b32.xlu1 %v1348_v6, %s1146_s29  ;;  %448 = vrot.lane.b32.xlu0 %v1350_v7, %s1146_s29 }
  0xb2   : > { %508 = vrot.lane.b32.xlu1 %v1336_v4, %s1147_s4  ;;  %500 = vrot.lane.b32.xlu0 %v1338_v5, %s1147_s4 }
  0xb6   : > { %560 = vrot.lane.b32.xlu1 %v1328_v3, %s1148_s6  ;;  %552 = vrot.lane.b32.xlu0 %v1322_v1, %s1148_s6 }
  0xba   : > { %612 = vrot.lane.b32.xlu1 %v1326_v2, %s1149_s11  ;;  %604 = vrot.lane.b32.xlu0 %v1320_v0, %s1149_s11 }
  0xbe   : > { %506 = vrot.lane.b32.xlu1 %v1348_v6, %s1147_s4  ;;  %498 = vrot.lane.b32.xlu0 %v1350_v7, %s1147_s4 }
  0xc2   : > { %558 = vrot.lane.b32.xlu1 %v1336_v4, %s1148_s6  ;;  %550 = vrot.lane.b32.xlu0 %v1338_v5, %s1148_s6 }
  0xc6   : > { %610 = vrot.lane.b32.xlu1 %v1328_v3, %s1149_s11  ;;  %602 = vrot.lane.b32.xlu0 %v1322_v1, %s1149_s11 }
  0xc8   : > { %v254_v10 = vpop.permute.xlu0 %253  ;;  %v252_v11 = vpop.permute.xlu1 %251 }
  0xca   : > { %556 = vrot.lane.b32.xlu1 %v1348_v6, %s1148_s6  ;;  %548 = vrot.lane.b32.xlu0 %v1350_v7, %s1148_s6 }
  0xcc   : > { %v262_v16 = vpop.permute.xlu0 %261  ;;  %v260_v17 = vpop.permute.xlu1 %259 }
  0xcd   : > { %v269_v18 = vsel %vm265_vm0, %v254_v10, %v262_v16  ;;  %v273_v19 = vsel %vm265_vm0, %v262_v16, %v254_v10  ;;  %v268_v20 = vsel %vm265_vm0, %v252_v11, %v260_v17  ;;  %v272_v21 = vsel %vm265_vm0, %v260_v17, %v252_v11  ;;  %v234_v17 = vld [vmem:[#allocation5 + $0x118] sm:$0xff] }
  0xce   : > { %v288_v24 = vmul.f32 %v280_v14, %v273_v19  ;;  %v289_v25 = vmul.f32 %v281_v15, %v269_v18  ;;  %608 = vrot.lane.b32.xlu1 %v1336_v4, %s1149_s11  ;;  %600 = vrot.lane.b32.xlu0 %v1338_v5, %s1149_s11  ;;  %v286_v49 = vmul.f32 %v278_v39, %v272_v21  ;;  %v233_v14 = vld [vmem:[#allocation5 + $0x110] sm:$0xff]  ;;  %v277_v19 = vld [vmem:[#allocation5 + $0x18] sm:$0xff] }
  0xcf   : > { %v287_v50 = vmul.f32 %v279_v40, %v268_v20  ;;  %v276_v18 = vld [vmem:[#allocation5 + $0x10] sm:$0xff] }
  0xd0   : > { %v305_v28 = vpop.permute.xlu0 %304  ;;  %v313_v29 = vpop.permute.xlu1 %312  ;;  %v296_v33 = vadd.f32 %v288_v24, %v245_v23  ;;  %v297_v34 = vadd.f32 %v289_v25, %v246_v22  ;;  %v294_v57 = vadd.f32 %v286_v49, %v243_v48  ;;  %v231_v49 = vld [vmem:[#allocation5 + $0x100] sm:$0xff] }
  0xd1   : > { %v318_v31 = vsel %vm314_vm1, %v305_v28, %v313_v29  ;;  %v322_v32 = vsel %vm314_vm1, %v313_v29, %v305_v28  ;;  %v295_v58 = vadd.f32 %v287_v50, %v244_v47 }
  0xd2   : > { %v338_v36 = vmul.f32 %v330_v26, %v322_v32  ;;  %v339_v37 = vmul.f32 %v331_v27, %v318_v31  ;;  %606 = vrot.lane.b32.xlu1 %v1348_v6, %s1149_s11  ;;  %598 = vrot.lane.b32.xlu0 %v1350_v7, %s1149_s11  ;;  %v242_v26 = vmul.f32 %v234_v17, %v1336_v4  ;;  %v326_v31 = vld [vmem:[#allocation5 + $0x50] sm:$0xff]  ;;  %v327_v32 = vld [vmem:[#allocation5 + $0x58] sm:$0xff] }
  0xd3   : > { %v241_v27 = vmul.f32 %v233_v14, %v1338_v5 }
  0xd4   : > { %v346_v41 = vadd.f32 %v338_v36, %v296_v33  ;;  %v347_v42 = vadd.f32 %v339_v37, %v297_v34  ;;  %v258_v43 = vpop.permute.xlu1 %257  ;;  %v250_v44 = vpop.permute.xlu0 %249 }
  0xd5   : > { %v267_v45 = vsel %vm265_vm0, %v250_v44, %v258_v43  ;;  %v271_v46 = vsel %vm265_vm0, %v258_v43, %v250_v44 }
  0xd6   : > { %v284_v28 = vmul.f32 %v276_v18, %v271_v46  ;;  %v285_v29 = vmul.f32 %v277_v19, %v267_v45  ;;  %v376_v18 = vld [vmem:[#allocation5 + $0x90] sm:$0xff]  ;;  %v377_v19 = vld [vmem:[#allocation5 + $0x98] sm:$0xff] }
  0xd8   : > { %v311_v53 = vpop.permute.xlu1 %310  ;;  %v303_v54 = vpop.permute.xlu0 %302  ;;  %v292_v37 = vadd.f32 %v284_v28, %v241_v27  ;;  %v293_v38 = vadd.f32 %v285_v29, %v242_v26 }
  0xd9   : > { %v317_v55 = vsel %vm314_vm1, %v303_v54, %v311_v53  ;;  %v321_v56 = vsel %vm314_vm1, %v311_v53, %v303_v54  ;;  %v274_v53 = vld [vmem:[#allocation5] sm:$0xff]  ;;  %v275_v54 = vld [vmem:[#allocation5 + $0x8] sm:$0xff] }
  0xda   : > { %v336_v59 = vmul.f32 %v328_v51, %v321_v56  ;;  %v337_v60 = vmul.f32 %v329_v52, %v317_v55  ;;  %v232_v52 = vld [vmem:[#allocation5 + $0x108] sm:$0xff] }
  0xdc   : > { %v344_v63 = vadd.f32 %v336_v59, %v294_v57  ;;  %v345_v8 = vadd.f32 %v337_v60, %v295_v58  ;;  %v363_v10 = vpop.permute.xlu1 %362  ;;  %v355_v11 = vpop.permute.xlu0 %354  ;;  %v240_v59 = vmul.f32 %v232_v52, %v1348_v6  ;;  %v239_v60 = vmul.f32 %v231_v49, %v1350_v7 }
  0xdd   : > { %v368_v12 = vsel %vm364_vm2, %v355_v11, %v363_v10  ;;  %v372_v13 = vsel %vm364_vm2, %v363_v10, %v355_v11  ;;  %v324_v10 = vld [vmem:[#allocation5 + $0x40] sm:$0xff]  ;;  %v325_v11 = vld [vmem:[#allocation5 + $0x48] sm:$0xff] }
  0xde   : > { %v388_v15 = vmul.f32 %v380_v61, %v372_v13  ;;  %v389_v16 = vmul.f32 %v381_v62, %v368_v12 }
  0xe0   : > { %v1451_v20 = vadd.f32 %v388_v15, %v346_v41  ;;  %v1453_v21 = vadd.f32 %v389_v16, %v347_v42  ;;  %v256_v22 = vpop.permute.xlu1 %255  ;;  %v248_v23 = vpop.permute.xlu0 %247  ;;  %v378_v41 = vld [vmem:[#allocation5 + $0xa0] sm:$0xff]  ;;  %v379_v42 = vld [vmem:[#allocation5 + $0xa8] sm:$0xff] }
  0xe1   : > { %v266_v24 = vsel %vm265_vm0, %v248_v23, %v256_v22  ;;  %v270_v25 = vsel %vm265_vm0, %v256_v22, %v248_v23 }
  0xe2   : > { %v282_v61 = vmul.f32 %v274_v53, %v270_v25  ;;  %v283_v62 = vmul.f32 %v275_v54, %v266_v24  ;;  %v430_v53 = vld [vmem:[#allocation5 + $0xf0] sm:$0xff]  ;;  %v431_v54 = vld [vmem:[#allocation5 + $0xf8] sm:$0xff] }
  0xe4   : > { %v309_v33 = vpop.permute.xlu1 %308  ;;  %v301_v34 = vpop.permute.xlu0 %300  ;;  %v291_v15 = vadd.f32 %v283_v62, %v240_v59 }
  0xe5   : > { %v316_v35 = vsel %vm314_vm1, %v301_v34, %v309_v33  ;;  %v320_v36 = vsel %vm314_vm1, %v309_v33, %v301_v34 }
  0xe6   : > { %v334_v39 = vmul.f32 %v326_v31, %v320_v36  ;;  %v335_v40 = vmul.f32 %v327_v32, %v316_v35 }
  0xe8   : > { %v342_v43 = vadd.f32 %v334_v39, %v292_v37  ;;  %v343_v44 = vadd.f32 %v335_v40, %v293_v38  ;;  %v361_v46 = vpop.permute.xlu1 %360  ;;  %v353_v45 = vpop.permute.xlu0 %352 }
  0xe9   : > { %v367_v47 = vsel %vm364_vm2, %v353_v45, %v361_v46  ;;  %v371_v48 = vsel %vm364_vm2, %v361_v46, %v353_v45 }
  0xea   : > { %v386_v50 = vmul.f32 %v378_v41, %v371_v48  ;;  %v387_v51 = vmul.f32 %v379_v42, %v367_v47 }
  0xec   : > { %v1469_v55 = vadd.f32 %v386_v50, %v344_v63  ;;  %v1471_v56 = vadd.f32 %v387_v51, %v345_v8  ;;  %v413_v57 = vpop.permute.xlu1 %412  ;;  %v405_v58 = vpop.permute.xlu0 %404  ;;  %v290_v8 = vadd.f32 %v282_v61, %v239_v60 }
  0xed   : > { %v418_v59 = vsel %vm414_vm3, %v405_v58, %v413_v57  ;;  %v422_v60 = vsel %vm414_vm3, %v413_v57, %v405_v58 }
  0xf0   : > { %v307_v12 = vpop.permute.xlu1 %306  ;;  %v299_v13 = vpop.permute.xlu0 %298 }
  0xf1   : > { %v315_v14 = vsel %vm314_vm1, %v299_v13, %v307_v12  ;;  %v319_v63 = vsel %vm314_vm1, %v307_v12, %v299_v13  ;;  %v480_v12 = vld [vmem:[#allocation5 + $0x170] sm:$0xff]  ;;  %v481_v13 = vld [vmem:[#allocation5 + $0x178] sm:$0xff] }
  0xf2   : > { %v332_v16 = vmul.f32 %v324_v10, %v319_v63  ;;  %v333_v17 = vmul.f32 %v325_v11, %v315_v14  ;;  %v438_v10 = vmul.f32 %v430_v53, %v422_v60  ;;  %v439_v11 = vmul.f32 %v431_v54, %v418_v59  ;;  %v374_v59 = vld [vmem:[#allocation5 + $0x80] sm:$0xff] }
  0xf4   : > { %v1479_v22 = vadd.f32 %v332_v16, %v290_v8  ;;  %v1481_v23 = vadd.f32 %v333_v17, %v291_v15  ;;  %v359_v24 = vpop.permute.xlu1 %358  ;;  %v351_v25 = vpop.permute.xlu0 %350  ;;  %v530_v8 = vld [vmem:[#allocation5 + $0x1b0] sm:$0xff]  ;;  %v531_v15 = vld [vmem:[#allocation5 + $0x1b8] sm:$0xff] }
  0xf5   : > { %v366_v26 = vsel %vm364_vm2, %v351_v25, %v359_v24  ;;  %v370_v27 = vsel %vm364_vm2, %v359_v24, %v351_v25  ;;  %v446_v24 = vadd.f32 %v438_v10, %v1451_v20  ;;  %v447_v25 = vadd.f32 %v439_v11, %v1453_v21 }
  0xf6   : > { %v384_v28 = vmul.f32 %v376_v18, %v370_v27  ;;  %v385_v29 = vmul.f32 %v377_v19, %v366_v26  ;;  %v580_v26 = vld [vmem:[#allocation5 + $0x1f0] sm:$0xff]  ;;  %v581_v27 = vld [vmem:[#allocation5 + $0x1f8] sm:$0xff] }
  0xf8   : > { %v1487_v31 = vadd.f32 %v384_v28, %v342_v43  ;;  %v1489_v32 = vadd.f32 %v385_v29, %v343_v44  ;;  %v411_v33 = vpop.permute.xlu1 %410  ;;  %v403_v34 = vpop.permute.xlu0 %402 }
  0xf9   : > { %v417_v53 = vsel %vm414_vm3, %v403_v34, %v411_v33 }
  0xfc   : > { %v463_v35 = vpop.permute.xlu1 %462  ;;  %v455_v36 = vpop.permute.xlu0 %454 }
  0xfd   : > { %v468_v14 = vsel %vm464_vm4, %v455_v36, %v463_v35  ;;  %v472_v63 = vsel %vm464_vm4, %v463_v35, %v455_v36  ;;  %v428_v35 = vld [vmem:[#allocation5 + $0xe0] sm:$0xff]  ;;  %v429_v36 = vld [vmem:[#allocation5 + $0xe8] sm:$0xff] }
  0xfe   : > { %v488_v18 = vmul.f32 %v480_v12, %v468_v14  ;;  %v489_v19 = vmul.f32 %v481_v13, %v472_v63  ;;  %v437_v13 = vmul.f32 %v429_v36, %v417_v53  ;;  %v631_v14 = vld [vmem:[#allocation5 + $0x238] sm:$0xff]  ;;  %v375_v63 = vld [vmem:[#allocation5 + $0x88] sm:$0xff] }
 0x100   : > { %v1491_v37 = vpop.permute.xlu1 %356  ;;  %v1493_v38 = vpop.permute.xlu0 %348 }
 0x101   : > { %v369_v60 = vsel %vm364_vm2, %v1491_v37, %v1493_v38 }
 0x104   : > { %v1495_v39 = vpop.permute.xlu1 %408  ;;  %v1497_v40 = vpop.permute.xlu0 %400 }
 0x108   : > { %v1499_v41 = vpop.permute.xlu1 %460  ;;  %v1501_v42 = vpop.permute.xlu0 %452 }
 0x10c   : > { %v513_v43 = vpop.permute.xlu1 %512  ;;  %v505_v46 = vpop.permute.xlu0 %504 }
 0x10d   : > { %v518_v16 = vsel %vm514_vm5, %v505_v46, %v513_v43  ;;  %v522_v17 = vsel %vm514_vm5, %v513_v43, %v505_v46  ;;  %v421_v43 = vsel %vm414_vm3, %v411_v33, %v403_v34  ;;  %v365_v33 = vsel %vm364_vm2, %v1493_v38, %v1491_v37  ;;  %v630_v34 = vld [vmem:[#allocation5 + $0x230] sm:$0xff] }
 0x10e   : > { %v538_v46 = vmul.f32 %v530_v8, %v518_v16  ;;  %v539_v20 = vmul.f32 %v531_v15, %v522_v17  ;;  %v436_v12 = vmul.f32 %v428_v35, %v421_v43  ;;  %v382_v8 = vmul.f32 %v374_v59, %v369_v60 }
 0x10f   : > { %v416_v15 = vsel %vm414_vm3, %v1497_v40, %v1495_v39  ;;  %v467_v37 = vsel %vm464_vm4, %v1501_v42, %v1499_v41 }
 0x110   : > { %v1503_v44 = vpop.permute.xlu1 %406  ;;  %v1505_v45 = vpop.permute.xlu0 %398  ;;  %v444_v43 = vadd.f32 %v436_v12, %v1469_v55  ;;  %v1581_v59 = vadd.f32 %v382_v8, %v1479_v22 }
 0x111   : > { %v419_v8 = vsel %vm414_vm3, %v1503_v44, %v1505_v45 }
 0x114   : > { %v1507_v47 = vpop.permute.xlu1 %458  ;;  %v1509_v48 = vpop.permute.xlu0 %450 }
 0x118   : > { %v1511_v49 = vpop.permute.xlu1 %510  ;;  %v1513_v50 = vpop.permute.xlu0 %502 }
 0x119   : > { %v521_v22 = vsel %vm514_vm5, %v1511_v49, %v1513_v50 }
 0x11c   : > { %v563_v51 = vpop.permute.xlu1 %562  ;;  %v555_v52 = vpop.permute.xlu0 %554 }
 0x11d   : > { %v568_v28 = vsel %vm564_vm6, %v555_v52, %v563_v51  ;;  %v572_v29 = vsel %vm564_vm6, %v563_v51, %v555_v52  ;;  %v496_v51 = vadd.f32 %v488_v18, %v446_v24  ;;  %v497_v52 = vadd.f32 %v489_v19, %v447_v25  ;;  %v426_v24 = vld [vmem:[#allocation5 + $0xd0] sm:$0xff] }
 0x11e   : > { %v588_v10 = vmul.f32 %v580_v26, %v568_v28  ;;  %v589_v11 = vmul.f32 %v581_v27, %v572_v29  ;;  %v420_v25 = vsel %vm414_vm3, %v1495_v39, %v1497_v40  ;;  %v427_v27 = vld [vmem:[#allocation5 + $0xd8] sm:$0xff]  ;;  %v478_v28 = vld [vmem:[#allocation5 + $0x160] sm:$0xff]  ;;  %v445_v39 = vadd.f32 %v437_v13, %v1471_v56  ;;  %v529_v13 = vld [vmem:[#allocation5 + $0x1a8] sm:$0xff] }
 0x11f   : > { %v546_v16 = vadd.f32 %v538_v46, %v496_v51  ;;  %v547_v17 = vadd.f32 %v539_v20, %v497_v52  ;;  %v383_v40 = vmul.f32 %v375_v63, %v365_v33  ;;  %v479_v46 = vld [vmem:[#allocation5 + $0x168] sm:$0xff]  ;;  %v471_v20 = vsel %vm464_vm4, %v1499_v41, %v1501_v42  ;;  %v528_v56 = vld [vmem:[#allocation5 + $0x1a0] sm:$0xff] }
 0x120   : > { %v1521_v61 = vpop.permute.xlu1 %456  ;;  %v1523_v62 = vpop.permute.xlu0 %448  ;;  %v434_v60 = vmul.f32 %v426_v24, %v420_v25  ;;  %v435_v55 = vmul.f32 %v427_v27, %v416_v15  ;;  %v486_v12 = vmul.f32 %v478_v28, %v467_v37  ;;  %v517_v33 = vsel %vm514_vm5, %v1513_v50, %v1511_v49  ;;  %v424_v63 = vld [vmem:[#allocation5 + $0xc0] sm:$0xff]  ;;  %v579_v50 = vld [vmem:[#allocation5 + $0x1e8] sm:$0xff]  ;;  %v477_v24 = vld [vmem:[#allocation5 + $0x158] sm:$0xff] }
 0x121   : > { %v597_v36 = vadd.f32 %v589_v11, %v547_v17  ;;  %v596_v53 = vadd.f32 %v588_v10, %v546_v16  ;;  %v487_v41 = vmul.f32 %v479_v46, %v471_v20  ;;  %v415_v42 = vsel %vm414_vm3, %v1505_v45, %v1503_v44  ;;  %v578_v49 = vld [vmem:[#allocation5 + $0x1e0] sm:$0xff]  ;;  %v629_v20 = vld [vmem:[#allocation5 + $0x228] sm:$0xff] }
 0x122   : > { %v466_v15 = vsel %vm464_vm4, %v1509_v48, %v1507_v47  ;;  %v470_v44 = vsel %vm464_vm4, %v1507_v47, %v1509_v48  ;;  %v536_v45 = vmul.f32 %v528_v56, %v517_v33  ;;  %v537_v25 = vmul.f32 %v529_v13, %v521_v22  ;;  %v628_v46 = vld [vmem:[#allocation5 + $0x220] sm:$0xff]  ;;  %v526_v13 = vld [vmem:[#allocation5 + $0x190] sm:$0xff] }
 0x123   : > { %v442_v27 = vadd.f32 %v434_v60, %v1487_v31  ;;  %v495_v28 = vadd.f32 %v487_v41, %v445_v39  ;;  %v474_v56 = vld [vmem:[#allocation5 + $0x140] sm:$0xff]  ;;  %v465_v31 = vsel %vm464_vm4, %v1523_v62, %v1521_v61 }
 0x124   : > { %v1531_v57 = vpop.permute.xlu1 %508  ;;  %v1533_v58 = vpop.permute.xlu0 %500 }
 0x125   : > { %v520_v60 = vsel %vm514_vm5, %v1531_v57, %v1533_v58 }
 0x128   : > { %v561_v54 = vpop.permute.xlu1 %560  ;;  %v553_v21 = vpop.permute.xlu0 %552 }
 0x129   : > { %v567_v16 = vsel %vm564_vm6, %v553_v21, %v561_v54  ;;  %v571_v17 = vsel %vm564_vm6, %v561_v54, %v553_v21  ;;  %v443_v54 = vadd.f32 %v435_v55, %v1489_v32  ;;  %v494_v21 = vadd.f32 %v486_v12, %v444_v43 }
 0x12a   : > { %v469_v32 = vsel %vm464_vm4, %v1521_v61, %v1523_v62  ;;  %v527_v61 = vld [vmem:[#allocation5 + $0x198] sm:$0xff] }
 0x12c   : > { %v613_v18 = vpop.permute.xlu1 %612  ;;  %v605_v19 = vpop.permute.xlu0 %604 }
 0x12d   : > { %v618_v38 = vsel %vm614_vm7, %v605_v19, %v613_v18  ;;  %v622_v26 = vsel %vm614_vm7, %v613_v18, %v605_v19  ;;  %v425_v18 = vld [vmem:[#allocation5 + $0xc8] sm:$0xff]  ;;  %v476_v19 = vld [vmem:[#allocation5 + $0x150] sm:$0xff] }
 0x12e   : > { %v638_v29 = vmul.f32 %v630_v34, %v618_v38  ;;  %v639_v35 = vmul.f32 %v631_v14, %v622_v26  ;;  %v391_v26 = vadd.f32 %v383_v40, %v1481_v23  ;;  %v433_v47 = vmul.f32 %v425_v18, %v415_v42  ;;  %v475_v23 = vld [vmem:[#allocation5 + $0x148] sm:$0xff] }
 0x12f   : > { %v484_v48 = vmul.f32 %v476_v19, %v466_v15  ;;  %v516_v40 = vsel %vm514_vm5, %v1533_v58, %v1531_v57  ;;  %v577_v15 = vld [vmem:[#allocation5 + $0x1d8] sm:$0xff]  ;;  %v535_v19 = vmul.f32 %v527_v61, %v520_v60  ;;  %v624_v61 = vld [vmem:[#allocation5 + $0x200] sm:$0xff] }
 0x130   : > { %v1583_v51 = vpop.permute.xlu1 %506  ;;  %v1585_v52 = vpop.permute.xlu0 %498  ;;  %v647_v10 = vadd.f32 %v639_v35, %v597_v36  ;;  %v646_v11 = vadd.f32 %v638_v29, %v596_v53  ;;  %v586_v29 = vmul.f32 %v578_v49, %v567_v16  ;;  %v587_v35 = vmul.f32 %v579_v50, %v571_v17 }
 0x131   : > { %v432_v36 = vmul.f32 %v424_v63, %v419_v8  ;;  %v485_v53 = vmul.f32 %v477_v24, %v470_v44  ;;  %v483_v63 = vmul.f32 %v475_v23, %v469_v32  ;;  %v576_v8 = vld [vmem:[#allocation5 + $0x1d0] sm:$0xff]  ;;  %v534_v18 = vmul.f32 %v526_v13, %v516_v40  ;;  %v524_v24 = vld [vmem:[#allocation5 + $0x180] sm:$0xff]  ;;  %v525_v44 = vld [vmem:[#allocation5 + $0x188] sm:$0xff] }
 0x132   : > { %v655_v34 = vmax.f32 %v647_v10, 0.0  ;;  %v654_v14 = vmax.f32 %v646_v11, 0.0  ;;  %v544_v10 = vadd.f32 %v536_v45, %v494_v21  ;;  %v545_v11 = vadd.f32 %v537_v25, %v495_v28 }
 0x133   : > { %v440_v42 = vadd.f32 %v432_v36, %v1581_v59  ;;  %v515_v59 = vsel %vm514_vm5, %v1585_v52, %v1583_v51  ;;  %v519_v45 = vsel %vm514_vm5, %v1583_v51, %v1585_v52  ;;  %v492_v25 = vadd.f32 %v484_v48, %v442_v27  ;;  %v626_v51 = vld [vmem:[#allocation5 + $0x210] sm:$0xff]  ;;  %v627_v52 = vld [vmem:[#allocation5 + $0x218] sm:$0xff] }
 0x134   : > { %v559_v37 = vpop.permute.xlu1 %558  ;;  %693 = vmatprep.subr.mxu0 %v655_v34  ;;  %896 = vmatprep.subr.mxu1 %v655_v34  ;;  %v551_v38 = vpop.permute.xlu0 %550  ;;  %v594_v62 = vadd.f32 %v586_v29, %v544_v10  ;;  %v595_v33 = vadd.f32 %v587_v35, %v545_v11  ;;  %v441_v34 = vadd.f32 %v433_v47, %v391_v26  ;;  %v574_v29 = vld [vmem:[#allocation5 + $0x1c0] sm:$0xff]  ;;  %v575_v35 = vld [vmem:[#allocation5 + $0x1c8] sm:$0xff] }
 0x135   : > { %694 = vmatpush1.msra.mxu0 %v654_v14  ;;  %900 = vmatpush1.msra.mxu1 %v654_v14  ;;  %v482_v14 = vmul.f32 %v474_v56, %v465_v31  ;;  %v566_v57 = vsel %vm564_vm6, %v551_v38, %v559_v37  ;;  %v570_v58 = vsel %vm564_vm6, %v559_v37, %v551_v38 }
 0x136   : > { %v493_v37 = vadd.f32 %v485_v53, %v443_v54  ;;  %v584_v21 = vmul.f32 %v576_v8, %v566_v57  ;;  %v585_v28 = vmul.f32 %v577_v15, %v570_v58  ;;  %v533_v10 = vmul.f32 %v525_v44, %v519_v45 }
 0x137   : > { %v491_v27 = vadd.f32 %v483_v63, %v441_v34  ;;  %v542_v54 = vadd.f32 %v534_v18, %v492_v25  ;;  %v218_v18 = vld [vmem:[#allocation7] sm:$0xff] }
 0x138   : > { %v611_v43 = vpop.permute.xlu1 %610  ;;  %v603_v39 = vpop.permute.xlu0 %602  ;;  %v543_v48 = vadd.f32 %v535_v19, %v493_v37  ;;  %v220_v19 = vld [vmem:[#allocation7 + $0x10] sm:$0xff] }
 0x139   : > { %v617_v55 = vsel %vm614_vm7, %v603_v39, %v611_v43  ;;  %v621_v12 = vsel %vm614_vm7, %v611_v43, %v603_v39  ;;  %v592_v43 = vadd.f32 %v584_v21, %v542_v54 }
 0x13a   : > { %v636_v22 = vmul.f32 %v628_v46, %v617_v55  ;;  %v637_v41 = vmul.f32 %v629_v20, %v621_v12  ;;  %v490_v46 = vadd.f32 %v482_v14, %v440_v42  ;;  %v532_v20 = vmul.f32 %v524_v24, %v515_v59  ;;  %v221_v24 = vld [vmem:[#allocation7 + $0x18] sm:$0xff] }
 0x13b   : > { %v593_v39 = vadd.f32 %v585_v28, %v543_v48  ;;  %v541_v12 = vadd.f32 %v533_v10, %v491_v27 }
 0x13c   : > { %v557_v49 = vpop.permute.xlu1 %556  ;;  %v549_v50 = vpop.permute.xlu0 %548  ;;  %v645_v16 = vadd.f32 %v637_v41, %v595_v33  ;;  %v644_v17 = vadd.f32 %v636_v22, %v594_v62  ;;  %v540_v55 = vadd.f32 %v532_v20, %v490_v46  ;;  %v625_v62 = vld [vmem:[#allocation5 + $0x208] sm:$0xff] }
 0x13d   : > { %v565_v36 = vsel %vm564_vm6, %v549_v50, %v557_v49  ;;  %v569_v47 = vsel %vm564_vm6, %v557_v49, %v549_v50 }
 0x13e   : > { %v653_v38 = vmax.f32 %v645_v16, 0.0  ;;  %v652_v26 = vmax.f32 %v644_v17, 0.0  ;;  %v582_v56 = vmul.f32 %v574_v29, %v565_v36  ;;  %v583_v23 = vmul.f32 %v575_v35, %v569_v47 }
 0x140   : > { %v609_v11 = vpop.permute.xlu1 %608  ;;  %695 = vmatprep.subr.mxu0 %v653_v38  ;;  %897 = vmatprep.subr.mxu1 %v653_v38  ;;  %v601_v53 = vpop.permute.xlu0 %600  ;;  %v590_v42 = vadd.f32 %v582_v56, %v540_v55  ;;  %v591_v34 = vadd.f32 %v583_v23, %v541_v12 }
 0x141   : > { %696 = vmatpush1.msra.mxu0 %v652_v26  ;;  %901 = vmatpush1.msra.mxu1 %v652_v26  ;;  %v616_v31 = vsel %vm614_vm7, %v601_v53, %v609_v11  ;;  %v620_v32 = vsel %vm614_vm7, %v609_v11, %v601_v53 }
 0x142   : > { %v634_v40 = vmul.f32 %v626_v51, %v616_v31  ;;  %v635_v60 = vmul.f32 %v627_v52, %v620_v32 }
 0x144   : > { %v607_v13 = vpop.permute.xlu1 %606  ;;  %v599_v33 = vpop.permute.xlu0 %598  ;;  %v643_v22 = vadd.f32 %v635_v60, %v593_v39  ;;  %v642_v41 = vadd.f32 %v634_v40, %v592_v43 }
 0x145   : > { %v615_v14 = vsel %vm614_vm7, %v599_v33, %v607_v13  ;;  %v619_v63 = vsel %vm614_vm7, %v607_v13, %v599_v33 }
 0x146   : > { %v632_v8 = vmul.f32 %v624_v61, %v615_v14  ;;  %v633_v15 = vmul.f32 %v625_v62, %v619_v63  ;;  %v651_v57 = vmax.f32 %v643_v22, 0.0  ;;  %v650_v58 = vmax.f32 %v642_v41, 0.0 }
 0x148   : > { %697 = vmatprep.subr.mxu0 %v651_v57  ;;  %898 = vmatprep.subr.mxu1 %v651_v57  ;;  %v641_v49 = vadd.f32 %v633_v15, %v591_v34  ;;  %v640_v50 = vadd.f32 %v632_v8, %v590_v42 }
 0x149   : > { %698 = vmatpush1.msra.mxu0 %v650_v58  ;;  %902 = vmatpush1.msra.mxu1 %v650_v58 }
 0x14a   : > { %v649_v16 = vmax.f32 %v641_v49, 0.0  ;;  %v648_v17 = vmax.f32 %v640_v50, 0.0 }
 0x14c   : > { %699 = vmatprep.subr.mxu0 %v649_v16  ;;  %899 = vmatprep.subr.mxu1 %v649_v16 }
 0x14d   : > { %700 = vmatpush1.msra.mxu0 %v648_v17  ;;  %903 = vmatpush1.msra.mxu1 %v648_v17 }
 0x14e   : > { %885 = vmatmul.mubr.msk.f32.vlgmr.msra.gmra.mxu0 %vm656_vm8, %v218_v18  ;;  %887 = vmatmul.mubr.msk.f32.vlgmr.msra.gmra.mxu1 %vm656_vm8, %v220_v19 }
 0x14f   : > { %739 = vmatprep.mubr.f32.mxu0 %v1150_v30  ;;  %751 = vmatprep.mubr.f32.mxu1 %v1150_v30 }
 0x152   : > { %886 = vmatmul.mubr.msk.f32.gmra.mxu0 %vm656_vm8, %v219_v9  ;;  %888 = vmatmul.mubr.msk.f32.gmra.mxu1 %vm656_vm8, %v221_v24 }
 0x20e   : > { %v735_v44 = vpop.f32.mrf.mxu0  ;;  %v747_v59 = vpop.f32.mrf.mxu1 }
 0x20f   : > { %v736_v45 = vadd.f32 %v735_v44, %v1350_v7  ;;  %v748_v25 = vadd.f32 %v747_v59, %v1322_v1 }
 0x210   : > { %v737_v37 = vpop.f32.mrf.mxu0  ;;  %v749_v38 = vpop.f32.mrf.mxu1 }
 0x211   : > { %758 = vst [vmem:[%s217_s23] sm:$0xff] %v736_v45  ;;  %762 = vst [vmem:[%s217_s23 + $0x20] sm:$0xff] %v748_v25  ;;  %v738_v30 = vadd.f32 %v737_v37, %v1348_v6  ;;  %v750_v26 = vadd.f32 %v749_v38, %v1328_v3 }
 0x212   : > { %v741_v21 = vpop.f32.mrf.mxu0  ;;  %v753_v28 = vpop.f32.mrf.mxu1 }
 0x213   : > { %759 = vst [vmem:[%s217_s23 + $0x8] sm:$0xff] %v738_v30  ;;  %763 = vst [vmem:[%s217_s23 + $0x28] sm:$0xff] %v750_v26  ;;  %v742_v1 = vadd.f32 %v741_v21, %v1338_v5  ;;  %v754_v7 = vadd.f32 %v753_v28, %v1320_v0 }
 0x214   : > { %v743_v29 = vpop.f32.mrf.mxu0  ;;  %v755_v35 = vpop.f32.mrf.mxu1 }
 0x215   : > { %760 = vst [vmem:[%s217_s23 + $0x10] sm:$0xff] %v742_v1  ;;  %764 = vst [vmem:[%s217_s23 + $0x30] sm:$0xff] %v754_v7  ;;  %v744_v3 = vadd.f32 %v743_v29, %v1336_v4  ;;  %v756_v6 = vadd.f32 %v755_v35, %v1326_v2 }
 0x217   : > { %761 = vst [vmem:[%s217_s23 + $0x18] sm:$0xff] %v744_v3  ;;  %765 = vst [vmem:[%s217_s23 + $0x38] sm:$0xff] %v756_v6 }
 0x218   : > { %1078 = shalt.err (!%p1075_p3)
}
 0x219   : > { %s1079_s27 = scalar_lea.hbm %s1681_s26, 1024  ;;  %s1083_s4 = scalar_lea.hbm %s1728_s3, 2048 }
 0x21a   : > { %p1080_p11 = scmp.ne.s32.totalorder %s1681_s26, %s1079_s27  ;;  %p1084_p4 = scmp.lt.s32.totalorder %s1681_s26, %s1728_s3 }
 0x21b   : > { %p1085_p6 = scmp.lt.s32.totalorder %s1083_s4, %s1079_s27 }
 0x21c   : > { %p1081_p9 = pnand %p1080_p11, %p1743_p2 }
 0x21d   : > { %p1086_p8 = por %p1085_p6, %p1084_p4 }
 0x21e   : > { %p1082_p1 = pneg %p1081_p9 }
 0x220   : > { %p1087_p10 = pnand %p1086_p8, %p1082_p1 }
 0x222   : > { %1090 = shalt.err (!%p1087_p10)
}
 0x223   : > { %s1152_s23 = smov 256  }
 0x224   : > { %914 = dma.vmem_to_hbm [thread:$0]  (%p1743_p2), %s1674_s24, 1024, %s1681_s26, %s767_s30, %s1152_s23, %s1152_s23, %s1143_s18  }
 0x225 PF: > { %s795_s22 = sand.u32 1, %s1121_s12   ;;  %p1744_p7 = scmp.ne.s32.totalorder %s1734_s19, 0 }
 0x226   : > { %p1745_p12 = scmp.ge.s32.totalorder %s1133_s15, 2  ;;  %s796_s16 = scalar_lea.sflag [#allocation4], %s795_s22 }
 0x228   : > { %p928_p13 = pnand %p1745_p12, %p1744_p7 }
 0x22a   : > { %p929_p0 = pneg %p928_p13 }
 0x22c   : > { %1116 = dma.done.wait (%p929_p0), %s796_s16, 1024  }
 0x22d   : > { %1118 = vsyncadd (%p929_p0), %s796_s16, 4294966272  ;;  %p17_p5 = scmp.ge.s32.totalorder %s1248_s9, 4   ;;  %s1746_s12 = smov %s1125_s13 }
 0x22e   : > { %s1747_s13 = smov %s1129_s14  ;;  %s1748_s14 = smov %s1257_s17 }
 0x22f   : > { %s1749_s15 = smov %s1248_s9  ;;  %19 = sbr.rel (!%p17_p5) target bundleno = 6 (0x6), region = 93 }
 0x234   :  { %801 = vsyncpa [#allocation3], 1 }
 0x235   :  { %803 = vsyncpa [#allocation3 + $0x1], 1 }
 0x236   :  { %804 = vsyncpa [#allocation6], 1 }
 0x237   :  { %805 = vsyncpa [#allocation4], 1 }
 0x238   :  { %807 = vsyncpa [#allocation4 + $0x1], 1 }

</bundles_post_ra>
